<compile_context>
chip_gen: v6e
topology: v6e:2x2x1
jax: 0.10.0
libtpu: 0.0.40
codegen_flags: <defaults>
</compile_context>

<pallas_src>
import math

import jax
import jax.numpy as jnp
from jax.experimental import pallas as pl
from jax.experimental.pallas import tpu as pltpu

_MIB = 1024 * 1024


def _round_up(a: int, m: int) -> int:
    return ((a + m - 1) // m) * m


def _cdiv(a: int, b: int) -> int:
    return -(-a // b)


def _vmem_capacity_bytes() -> int:
    try:
        return int(pltpu.get_tpu_info().vmem_capacity_bytes)
    except Exception:
        return 64 * _MIB  # conservative fallback: v7x per-TensorCore VMEM


def _logreg_kernel(x_ref, w_ref, b_ref, o_ref):
    # x_ref: (TR, k*F) VMEM    -- k batch rows lane-packed per VMEM row
    # w_ref: (k*F, k) f32 VMEM -- block-diagonal weight, resident across tiles
    # b_ref: (1,)  f32 SMEM    -- bias scalar
    # o_ref: (TR, k)   VMEM    -- sigmoid(x @ w.T + b), k results per row
    x = x_ref[...].astype(jnp.float32)
    z = jnp.dot(x, w_ref[...], preferred_element_type=jnp.float32)  # MXU
    z = z + b_ref[0]                                                 # SMEM scalar
    o_ref[...] = jax.nn.sigmoid(z).astype(o_ref.dtype)               # EUP


def logistic_regression(x, weight, bias, *, tile_budget_bytes=16 * _MIB):
    """x: (B, F); weight: (1, F) (PyTorch nn.Linear layout); bias: (1,).
    Returns sigmoid(x @ weight.T + bias) of shape (B, 1)."""
    B, F = x.shape
    itemsize = jnp.dtype(x.dtype).itemsize

    # ---- lane-packing factor: k batch rows per packed row, (k*F) % 128 == 0 ----
    k_min = 128 // math.gcd(F, 128)
    if k_min <= 32:
        # Grow k toward ~32: denser output block; the k-fold redundant MXU work
        # is still hidden under the HBM-bound input DMA on all generations.
        k = k_min * max(1, min(32 // k_min, 8))
    else:
        # TODO(synk): F with 128/gcd(F,128) > 32 -> fall back to unpacked rows
        # (lane-padded input) instead of a hugely redundant matmul.
        k = 1
    Wp = k * F                                   # packed row width (lanes)

    # ---- tile sizing with lane-padding-aware VMEM accounting ----
    cap = _vmem_capacity_bytes()
    in_row_bytes = _round_up(Wp, 128) * itemsize          # per packed row, per buffer
    out_row_bytes = _round_up(k, 128) * itemsize
    per_row_bytes = 2 * (in_row_bytes + out_row_bytes)    # double-buffered in + out
    wmat_vmem = _round_up(Wp, 8) * 128 * 4                # (Wp, k) f32, lane-padded

    rows_budget = tile_budget_bytes // max(1, Wp * itemsize)   # "real data" knob
    rows_cap = (cap // 2) // per_row_bytes                     # capacity clamp
    TR_max = (min(rows_budget, rows_cap) // 8) * 8
    if TR_max < 8:
        TR_max = 8
    if 8 * per_row_bytes + wmat_vmem > cap - 8 * _MIB:
        # TODO(synk): tile the feature dimension (reduction grid axis) instead.
        raise ValueError(
            f"n_input={F} too large for a single-feature-tile kernel "
            f"(minimal tile needs {8 * per_row_bytes + wmat_vmem} bytes of VMEM)")

    # ---- grid: batch tiles (even count when >1 so v7x can use both cores) ----
    Rp = _cdiv(B, k)                              # packed rows needed
    num_tiles = _cdiv(Rp, TR_max)
    if num_tiles > 1 and num_tiles % 2 == 1:
        num_tiles += 1
    TR = _round_up(_cdiv(Rp, num_tiles), 8)       # packed rows per tile
    Rp_pad = TR * num_tiles
    Bp = Rp_pad * k

    # ---- operands ----
    xp = x if Bp == B else jnp.pad(x, ((0, Bp - B), (0, 0)))
    xp = xp.reshape(Rp_pad, Wp)                   # free row-major view; contiguous DMA

    w_flat = jnp.asarray(weight, dtype=jnp.float32).reshape(F)     # keep weights f32
    eye_k = jnp.eye(k, dtype=jnp.float32)
    w_mat = (eye_k[:, None, :] * w_flat[None, :, None]).reshape(Wp, k)
    b1 = jnp.asarray(bias, dtype=jnp.float32).reshape(1)

    # ---- VMEM limit from the actual footprint (+ headroom, <= capacity) ----
    buffers_bytes = TR * per_row_bytes
    vmem_limit = min(cap - 8 * _MIB,
                     max(32 * _MIB, buffers_bytes + wmat_vmem + 16 * _MIB))

    out = pl.pallas_call(
        _logreg_kernel,
        out_shape=jax.ShapeDtypeStruct((Rp_pad, k), x.dtype),
        grid_spec=pltpu.PrefetchScalarGridSpec(
            num_scalar_prefetch=0,
            grid=(num_tiles,),
            in_specs=[
                pl.BlockSpec((TR, Wp), lambda i: (i, 0)),   # streamed, double-buffered
                pl.BlockSpec((Wp, k), lambda i: (0, 0)),    # weight resident in VMEM
                pl.BlockSpec(memory_space=pltpu.MemorySpace.SMEM),  # bias scalar
            ],
            out_specs=pl.BlockSpec((TR, k), lambda i: (i, 0)),
        ),
        compiler_params=pltpu.CompilerParams(
            dimension_semantics=("parallel",),    # independent batch tiles
            vmem_limit_bytes=int(vmem_limit),
        ),
    )(xp, w_mat, b1)

    # Un-pack: row-major flatten restores batch order; drop padded rows.
    return out.reshape(-1)[:B].reshape(B, 1)


if __name__ == "__main__":
    key = jax.random.PRNGKey(0)
    kx, kw, kb = jax.random.split(key, 3)

    batch, n_input = 8, 32   # small shapes consistent with nn.Linear(n_input, 1)

    x = jax.random.normal(kx, (batch, n_input), dtype=jnp.float32)
    # Deterministic init mimicking nn.Linear default (uniform in +/- 1/sqrt(n_input))
    bound = 1.0 / float(n_input) ** 0.5
    weight = jax.random.uniform(kw, (1, n_input), minval=-bound, maxval=bound,
                                dtype=jnp.float32)
    bias = jax.random.uniform(kb, (1,), minval=-bound, maxval=bound,
                              dtype=jnp.float32)

    out = jax.block_until_ready(logistic_regression(x, weight, bias))

    # sanity check against plain-JAX reference
    ref = jax.nn.sigmoid(x @ weight.T + bias)
    assert out.shape == (batch, 1)
    assert jnp.allclose(out, ref, atol=1e-5, rtol=1e-5)

    print("KERNEL_OK")
</pallas_src>

<mosaic_0001>
module attributes {stable_mosaic.version = 11 : i64} {
  func.func @_logreg_kernel(%arg0: i32, %arg1: memref<8x1024xf32, #tpu.memory_space<vmem>>, %arg2: memref<1024x32xf32, #tpu.memory_space<vmem>>, %arg3: memref<1xf32, #tpu.memory_space<smem>>, %arg4: memref<8x32xf32, #tpu.memory_space<vmem>>) attributes {dimension_semantics = [#tpu.dimension_semantics<parallel>], iteration_bounds = array<i64: 1>, scalar_prefetch = 0 : i64, scratch_operands = 0 : i64, tpu.core_type = #tpu.core_type<tc>, window_params = [{transform_indices = @transform_0, window_bounds = array<i64: 8, 1024>}, {pipeline_mode = #tpu.pipeline_mode<synchronous>, transform_indices = @transform_1, window_bounds = array<i64: 1024, 32>}, {transform_indices = @transform_2, window_bounds = array<i64: 1>}, {transform_indices = @transform_3, window_bounds = array<i64: 8, 32>}]} {
    %c0 = arith.constant 0 : index
    %c0_0 = arith.constant 0 : index
    %0 = vector.load %arg1[%c0, %c0_0] : memref<8x1024xf32, #tpu.memory_space<vmem>>, vector<8x1024xf32>
    %c0_1 = arith.constant 0 : index
    %c0_2 = arith.constant 0 : index
    %1 = vector.load %arg2[%c0_1, %c0_2] : memref<1024x32xf32, #tpu.memory_space<vmem>>, vector<1024x32xf32>
    %cst = arith.constant dense<0.000000e+00> : vector<8x32xf32>
    %2 = tpu.matmul %0, %1, %cst {dimension_numbers = #tpu.dot_dimension_numbers<[1], [0], [0], [1], [0, 0, 1, 1], [], []>} : vector<8x1024xf32>, vector<1024x32xf32>, vector<8x32xf32> -> vector<8x32xf32>
    %c0_3 = arith.constant 0 : index
    %3 = memref.load %arg3[%c0_3] : memref<1xf32, #tpu.memory_space<smem>>
    %4 = vector.broadcast %3 : f32 to vector<8x32xf32>
    %5 = arith.addf %2, %4 : vector<8x32xf32>
    %6 = arith.negf %5 : vector<8x32xf32>
    %7 = math.exp %6 : vector<8x32xf32>
    %cst_4 = arith.constant 1.000000e+00 : f32
    %8 = vector.broadcast %cst_4 : f32 to vector<8x32xf32>
    %9 = arith.addf %8, %7 : vector<8x32xf32>
    %10 = arith.divf %8, %9 : vector<8x32xf32>
    %c0_5 = arith.constant 0 : index
    %c0_6 = arith.constant 0 : index
    %11 = vector.load %arg4[%c0_5, %c0_6] : memref<8x32xf32, #tpu.memory_space<vmem>>, vector<8x32xf32>
    tpu.vector_store %arg4[%c0_5, %c0_6], %10 {strides = array<i32>} : memref<8x32xf32, #tpu.memory_space<vmem>>, vector<8x32xf32>,
    return
  }
  func.func @transform_0(%arg0: i32) -> (i32, i32) {
    %c0_i32 = arith.constant 0 : i32
    %c0_i32_0 = arith.constant 0 : i32
    return %arg0, %c0_i32 : i32, i32
  }
  func.func @transform_1(%arg0: i32) -> (i32, i32) {
    %c0_i32 = arith.constant 0 : i32
    %c0_i32_0 = arith.constant 0 : i32
    %c0_i32_1 = arith.constant 0 : i32
    return %c0_i32, %c0_i32_0 : i32, i32
  }
  func.func @transform_2(%arg0: i32) -> i32 {
    %c0_i32 = arith.constant 0 : i32
    %c0_i32_0 = arith.constant 0 : i32
    return %c0_i32 : i32
  }
  func.func @transform_3(%arg0: i32) -> (i32, i32) {
    %c0_i32 = arith.constant 0 : i32
    %c0_i32_0 = arith.constant 0 : i32
    return %arg0, %c0_i32 : i32, i32
  }
}

</mosaic_0001>

<bundles_post_ra>
// kernel: tpu_custom_call.1
= control target key start
LH: loop header
LB: loop body
LE: loop exit
PB: predicated region body
PF: predicated region fallthrough
CT: control target
= control target key end

     0   :  { %s1059_s0 = inlined_call_operand.vmem [shape: f32[8,1024], index: 0, kind: input, shape index: {}]   ;;  %s1060_s1 = inlined_call_operand.vmem [shape: f32[1024,32], index: 1, kind: input, shape index: {}]   ;;  %s1061_s2 = inlined_call_operand.<no memory space> [shape: f32[1], index: 2, kind: input, shape index: {}]   ;;  %s1062_s3 = inlined_call_operand.hbm [shape: f32[8,32], index: 3, kind: output, shape index: {}]  }
   0x1   :  { %v55_v0 = vld [vmem:[%s1060_s1 + $0xf8] sm:$0xff]  ;;  %v54_v4 = vld [vmem:[%s1060_s1 + $0xf0] sm:$0xff]  ;;  %v53_v8 = vld [vmem:[%s1060_s1 + $0xe8] sm:$0xff] }
   0x2   :  { %v87_v1 = vld [vmem:[%s1060_s1 + $0x1f8] sm:$0xff]  ;;  %457 = vmatprep.subr.mxu0 %v55_v0  ;;  %v86_v5 = vld [vmem:[%s1060_s1 + $0x1f0] sm:$0xff]  ;;  %v85_v9 = vld [vmem:[%s1060_s1 + $0x1e8] sm:$0xff] }
   0x3   :  { %v39_v2 = vld [vmem:[%s1060_s1 + $0x78] sm:$0xff]  ;;  %492 = vmatprep.subr.mxu1 %v87_v1  ;;  %v38_v6 = vld [vmem:[%s1060_s1 + $0x70] sm:$0xff]  ;;  %v37_v10 = vld [vmem:[%s1060_s1 + $0x68] sm:$0xff] }
   0x4   :  { %v71_v3 = vld [vmem:[%s1060_s1 + $0x178] sm:$0xff]  ;;  %458 = vmatpush3.msra.mxu0 %v39_v2  ;;  %v70_v7 = vld [vmem:[%s1060_s1 + $0x170] sm:$0xff]  ;;  %v69_v11 = vld [vmem:[%s1060_s1 + $0x168] sm:$0xff] }
   0x5   :  { %493 = vmatpush3.msra.mxu1 %v71_v3  ;;  %459 = vmatprep.subr.mxu0 %v54_v4  ;;  %v52_v12 = vld [vmem:[%s1060_s1 + $0xe0] sm:$0xff]  ;;  %v51_v16 = vld [vmem:[%s1060_s1 + $0xd8] sm:$0xff]  ;;  %v50_v20 = vld [vmem:[%s1060_s1 + $0xd0] sm:$0xff] }
   0x6   :  { %494 = vmatprep.subr.mxu1 %v86_v5  ;;  %460 = vmatpush3.msra.mxu0 %v38_v6  ;;  %v84_v13 = vld [vmem:[%s1060_s1 + $0x1e0] sm:$0xff]  ;;  %v83_v17 = vld [vmem:[%s1060_s1 + $0x1d8] sm:$0xff]  ;;  %v82_v21 = vld [vmem:[%s1060_s1 + $0x1d0] sm:$0xff] }
   0x7   :  { %495 = vmatpush3.msra.mxu1 %v70_v7  ;;  %461 = vmatprep.subr.mxu0 %v53_v8  ;;  %v36_v14 = vld [vmem:[%s1060_s1 + $0x60] sm:$0xff]  ;;  %v35_v18 = vld [vmem:[%s1060_s1 + $0x58] sm:$0xff]  ;;  %v34_v22 = vld [vmem:[%s1060_s1 + $0x50] sm:$0xff] }
   0x8   :  { %496 = vmatprep.subr.mxu1 %v85_v9  ;;  %v68_v15 = vld [vmem:[%s1060_s1 + $0x160] sm:$0xff]  ;;  %462 = vmatpush3.msra.mxu0 %v37_v10  ;;  %v67_v19 = vld [vmem:[%s1060_s1 + $0x158] sm:$0xff]  ;;  %v66_v23 = vld [vmem:[%s1060_s1 + $0x150] sm:$0xff] }
   0x9   :  { %497 = vmatpush3.msra.mxu1 %v69_v11  ;;  %463 = vmatprep.subr.mxu0 %v52_v12  ;;  %v49_v24 = vld [vmem:[%s1060_s1 + $0xc8] sm:$0xff]  ;;  %v48_v28 = vld [vmem:[%s1060_s1 + $0xc0] sm:$0xff]  ;;  %v47_v32 = vld [vmem:[%s1060_s1 + $0xb8] sm:$0xff] }
   0xa   :  { %498 = vmatprep.subr.mxu1 %v84_v13  ;;  %464 = vmatpush3.msra.mxu0 %v36_v14  ;;  %v81_v25 = vld [vmem:[%s1060_s1 + $0x1c8] sm:$0xff]  ;;  %v80_v29 = vld [vmem:[%s1060_s1 + $0x1c0] sm:$0xff]  ;;  %v79_v33 = vld [vmem:[%s1060_s1 + $0x1b8] sm:$0xff] }
   0xb   :  { %499 = vmatpush3.msra.mxu1 %v68_v15  ;;  %465 = vmatprep.subr.mxu0 %v51_v16  ;;  %v33_v26 = vld [vmem:[%s1060_s1 + $0x48] sm:$0xff]  ;;  %v32_v30 = vld [vmem:[%s1060_s1 + $0x40] sm:$0xff]  ;;  %v31_v34 = vld [vmem:[%s1060_s1 + $0x38] sm:$0xff] }
   0xc   :  { %500 = vmatprep.subr.mxu1 %v83_v17  ;;  %466 = vmatpush3.msra.mxu0 %v35_v18  ;;  %v65_v27 = vld [vmem:[%s1060_s1 + $0x148] sm:$0xff]  ;;  %v64_v31 = vld [vmem:[%s1060_s1 + $0x140] sm:$0xff]  ;;  %v63_v35 = vld [vmem:[%s1060_s1 + $0x138] sm:$0xff] }
   0xd   :  { %501 = vmatpush3.msra.mxu1 %v67_v19  ;;  %467 = vmatprep.subr.mxu0 %v50_v20  ;;  %v46_v36 = vld [vmem:[%s1060_s1 + $0xb0] sm:$0xff]  ;;  %v45_v40 = vld [vmem:[%s1060_s1 + $0xa8] sm:$0xff]  ;;  %v44_v44 = vld [vmem:[%s1060_s1 + $0xa0] sm:$0xff] }
   0xe   :  { %502 = vmatprep.subr.mxu1 %v82_v21  ;;  %468 = vmatpush3.msra.mxu0 %v34_v22  ;;  %v78_v37 = vld [vmem:[%s1060_s1 + $0x1b0] sm:$0xff]  ;;  %v77_v41 = vld [vmem:[%s1060_s1 + $0x1a8] sm:$0xff]  ;;  %v76_v45 = vld [vmem:[%s1060_s1 + $0x1a0] sm:$0xff] }
   0xf   :  { %503 = vmatpush3.msra.mxu1 %v66_v23  ;;  %469 = vmatprep.subr.mxu0 %v49_v24  ;;  %v30_v38 = vld [vmem:[%s1060_s1 + $0x30] sm:$0xff]  ;;  %v29_v42 = vld [vmem:[%s1060_s1 + $0x28] sm:$0xff]  ;;  %v28_v46 = vld [vmem:[%s1060_s1 + $0x20] sm:$0xff] }
  0x10   :  { %504 = vmatprep.subr.mxu1 %v81_v25  ;;  %470 = vmatpush3.msra.mxu0 %v33_v26  ;;  %v62_v39 = vld [vmem:[%s1060_s1 + $0x130] sm:$0xff]  ;;  %v61_v43 = vld [vmem:[%s1060_s1 + $0x128] sm:$0xff]  ;;  %v60_v47 = vld [vmem:[%s1060_s1 + $0x120] sm:$0xff] }
  0x11   :  { %505 = vmatpush3.msra.mxu1 %v65_v27  ;;  %471 = vmatprep.subr.mxu0 %v48_v28  ;;  %v43_v48 = vld [vmem:[%s1060_s1 + $0x98] sm:$0xff]  ;;  %v42_v52 = vld [vmem:[%s1060_s1 + $0x90] sm:$0xff]  ;;  %v41_v56 = vld [vmem:[%s1060_s1 + $0x88] sm:$0xff] }
  0x12   :  { %506 = vmatprep.subr.mxu1 %v80_v29  ;;  %472 = vmatpush3.msra.mxu0 %v32_v30  ;;  %v75_v49 = vld [vmem:[%s1060_s1 + $0x198] sm:$0xff]  ;;  %v74_v53 = vld [vmem:[%s1060_s1 + $0x190] sm:$0xff]  ;;  %v73_v57 = vld [vmem:[%s1060_s1 + $0x188] sm:$0xff] }
  0x13   :  { %507 = vmatpush3.msra.mxu1 %v64_v31  ;;  %473 = vmatprep.subr.mxu0 %v47_v32  ;;  %v27_v50 = vld [vmem:[%s1060_s1 + $0x18] sm:$0xff]  ;;  %v26_v54 = vld [vmem:[%s1060_s1 + $0x10] sm:$0xff]  ;;  %v25_v58 = vld [vmem:[%s1060_s1 + $0x8] sm:$0xff] }
  0x14   :  { %508 = vmatprep.subr.mxu1 %v79_v33  ;;  %474 = vmatpush3.msra.mxu0 %v31_v34  ;;  %v59_v51 = vld [vmem:[%s1060_s1 + $0x118] sm:$0xff]  ;;  %v58_v55 = vld [vmem:[%s1060_s1 + $0x110] sm:$0xff]  ;;  %v57_v59 = vld [vmem:[%s1060_s1 + $0x108] sm:$0xff] }
  0x15   :  { %509 = vmatpush3.msra.mxu1 %v63_v35  ;;  %475 = vmatprep.subr.mxu0 %v46_v36  ;;  %v40_v60 = vld [vmem:[%s1060_s1 + $0x80] sm:$0xff]  ;;  %v17_v63 = vld [vmem:[%s1059_s0 + $0x8] sm:$0xff]  ;;  %v19_v2 = vld [vmem:[%s1059_s0 + $0x18] sm:$0xff] }
  0x16   :  { %510 = vmatprep.subr.mxu1 %v78_v37  ;;  %476 = vmatpush3.msra.mxu0 %v30_v38  ;;  %v72_v61 = vld [vmem:[%s1060_s1 + $0x180] sm:$0xff]  ;;  %v119_v3 = vld [vmem:[%s1060_s1 + $0x2f8] sm:$0xff]  ;;  %v18_v5 = vld [vmem:[%s1059_s0 + $0x10] sm:$0xff] }
  0x17   :  { %511 = vmatpush3.msra.mxu1 %v62_v39  ;;  %477 = vmatprep.subr.mxu0 %v45_v40  ;;  %v24_v62 = vld [vmem:[%s1060_s1] sm:$0xff]  ;;  %v151_v4 = vld [vmem:[%s1060_s1 + $0x3f8] sm:$0xff]  ;;  %v118_v8 = vld [vmem:[%s1060_s1 + $0x2f0] sm:$0xff] }
  0x18   :  { %512 = vmatprep.subr.mxu1 %v77_v41  ;;  %478 = vmatpush3.msra.mxu0 %v29_v42  ;;  %v56_v0 = vld [vmem:[%s1060_s1 + $0x100] sm:$0xff]  ;;  %v103_v6 = vld [vmem:[%s1060_s1 + $0x278] sm:$0xff]  ;;  %v150_v9 = vld [vmem:[%s1060_s1 + $0x3f0] sm:$0xff] }
  0x19   :  { %513 = vmatpush3.msra.mxu1 %v61_v43  ;;  %479 = vmatprep.subr.mxu0 %v44_v44  ;;  %v16_v1 = vld [vmem:[%s1059_s0] sm:$0xff]  ;;  %v135_v7 = vld [vmem:[%s1060_s1 + $0x378] sm:$0xff]  ;;  %v102_v10 = vld [vmem:[%s1060_s1 + $0x270] sm:$0xff] }
  0x1a   :  { %514 = vmatprep.subr.mxu1 %v76_v45  ;;  %480 = vmatpush3.msra.mxu0 %v28_v46  ;;  %v134_v11 = vld [vmem:[%s1060_s1 + $0x370] sm:$0xff]  ;;  %v117_v12 = vld [vmem:[%s1060_s1 + $0x2e8] sm:$0xff]  ;;  %v116_v16 = vld [vmem:[%s1060_s1 + $0x2e0] sm:$0xff] }
  0x1b   :  { %515 = vmatpush3.msra.mxu1 %v60_v47  ;;  %481 = vmatprep.subr.mxu0 %v43_v48  ;;  %v149_v13 = vld [vmem:[%s1060_s1 + $0x3e8] sm:$0xff]  ;;  %v148_v17 = vld [vmem:[%s1060_s1 + $0x3e0] sm:$0xff]  ;;  %v115_v20 = vld [vmem:[%s1060_s1 + $0x2d8] sm:$0xff] }
  0x1c   :  { %516 = vmatprep.subr.mxu1 %v75_v49  ;;  %482 = vmatpush3.msra.mxu0 %v27_v50  ;;  %v101_v14 = vld [vmem:[%s1060_s1 + $0x268] sm:$0xff]  ;;  %v100_v18 = vld [vmem:[%s1060_s1 + $0x260] sm:$0xff]  ;;  %v147_v21 = vld [vmem:[%s1060_s1 + $0x3d8] sm:$0xff] }
  0x1d   :  { %517 = vmatpush3.msra.mxu1 %v59_v51  ;;  %483 = vmatprep.subr.mxu0 %v42_v52  ;;  %v133_v15 = vld [vmem:[%s1060_s1 + $0x368] sm:$0xff]  ;;  %v132_v19 = vld [vmem:[%s1060_s1 + $0x360] sm:$0xff]  ;;  %v99_v22 = vld [vmem:[%s1060_s1 + $0x258] sm:$0xff] }
  0x1e   :  { %518 = vmatprep.subr.mxu1 %v74_v53  ;;  %484 = vmatpush3.msra.mxu0 %v26_v54  ;;  %v131_v23 = vld [vmem:[%s1060_s1 + $0x358] sm:$0xff]  ;;  %v114_v24 = vld [vmem:[%s1060_s1 + $0x2d0] sm:$0xff]  ;;  %v113_v28 = vld [vmem:[%s1060_s1 + $0x2c8] sm:$0xff] }
  0x1f   :  { %519 = vmatpush3.msra.mxu1 %v58_v55  ;;  %485 = vmatprep.subr.mxu0 %v41_v56  ;;  %v146_v25 = vld [vmem:[%s1060_s1 + $0x3d0] sm:$0xff]  ;;  %v145_v29 = vld [vmem:[%s1060_s1 + $0x3c8] sm:$0xff] }
  0x20   :  { %520 = vmatprep.subr.mxu1 %v73_v57  ;;  %486 = vmatpush3.msra.mxu0 %v25_v58  ;;  %v98_v26 = vld [vmem:[%s1060_s1 + $0x250] sm:$0xff]  ;;  %v97_v30 = vld [vmem:[%s1060_s1 + $0x248] sm:$0xff] }
  0x21   :  { %521 = vmatpush3.msra.mxu1 %v57_v59  ;;  %487 = vmatprep.subr.mxu0 %v40_v60  ;;  %v130_v27 = vld [vmem:[%s1060_s1 + $0x350] sm:$0xff]  ;;  %v129_v31 = vld [vmem:[%s1060_s1 + $0x348] sm:$0xff] }
  0x22   :  { %522 = vmatprep.subr.mxu1 %v72_v61  ;;  %488 = vmatpush3.msra.mxu0 %v24_v62 }
  0x23   :  { %218 = vmatprep.mubr.f32.mxu0 %v17_v63  ;;  %523 = vmatpush3.msra.mxu1 %v56_v0 }
  0x24   :  { %219 = vmatmul.mubr.f32.vlgmr.msra.gmra.mxu0 %v16_v1  ;;  %288 = vmatprep.mubr.f32.mxu1 %v19_v2 }
  0x25   :  { %527 = vmatprep.subr.mxu0 %v119_v3  ;;  %562 = vmatprep.subr.mxu1 %v151_v4 }
  0x26   :  { %289 = vmatmul.mubr.f32.vlgmr.msra.gmra.mxu1 %v18_v5  ;;  %528 = vmatpush3.msra.mxu0 %v103_v6 }
  0x27   :  { %563 = vmatpush3.msra.mxu1 %v135_v7  ;;  %529 = vmatprep.subr.mxu0 %v118_v8 }
  0x28   :  { %564 = vmatprep.subr.mxu1 %v150_v9  ;;  %530 = vmatpush3.msra.mxu0 %v102_v10 }
  0x29   :  { %565 = vmatpush3.msra.mxu1 %v134_v11  ;;  %531 = vmatprep.subr.mxu0 %v117_v12 }
  0x2a   :  { %566 = vmatprep.subr.mxu1 %v149_v13  ;;  %532 = vmatpush3.msra.mxu0 %v101_v14 }
  0x2b   :  { %567 = vmatpush3.msra.mxu1 %v133_v15  ;;  %533 = vmatprep.subr.mxu0 %v116_v16 }
  0x2c   :  { %568 = vmatprep.subr.mxu1 %v148_v17  ;;  %534 = vmatpush3.msra.mxu0 %v100_v18 }
  0x2d   :  { %569 = vmatpush3.msra.mxu1 %v132_v19  ;;  %535 = vmatprep.subr.mxu0 %v115_v20 }
  0x2e   :  { %570 = vmatprep.subr.mxu1 %v147_v21  ;;  %536 = vmatpush3.msra.mxu0 %v99_v22 }
  0x2f   :  { %571 = vmatpush3.msra.mxu1 %v131_v23  ;;  %537 = vmatprep.subr.mxu0 %v114_v24 }
  0x30   :  { %572 = vmatprep.subr.mxu1 %v146_v25 }
  0x31   :  { %9 = vsyncpa [#allocation4], 0  ;;  %538 = vmatpush3.msra.mxu0 %v98_v26  ;;  %573 = vmatpush3.msra.mxu1 %v130_v27  ;;  %v112_v32 = vld [vmem:[%s1060_s1 + $0x2c0] sm:$0xff]  ;;  %v111_v36 = vld [vmem:[%s1060_s1 + $0x2b8] sm:$0xff]  ;;  %v153_v12 = vstv %s1061_s2  ;;  %vm440_vm0 = vcmask 261120  }
  0x32   :  { %v144_v33 = vld [vmem:[%s1060_s1 + $0x3c0] sm:$0xff]  ;;  %539 = vmatprep.subr.mxu0 %v113_v28  ;;  %574 = vmatprep.subr.mxu1 %v145_v29  ;;  %v143_v37 = vld [vmem:[%s1060_s1 + $0x3b8] sm:$0xff]  ;;  %v110_v40 = vld [vmem:[%s1060_s1 + $0x2b0] sm:$0xff] }
  0x33   :  { %v96_v34 = vld [vmem:[%s1060_s1 + $0x240] sm:$0xff]  ;;  %540 = vmatpush3.msra.mxu0 %v97_v30  ;;  %575 = vmatpush3.msra.mxu1 %v129_v31  ;;  %v95_v38 = vld [vmem:[%s1060_s1 + $0x238] sm:$0xff]  ;;  %v142_v41 = vld [vmem:[%s1060_s1 + $0x3b0] sm:$0xff] }
  0x34   :  { %v128_v35 = vld [vmem:[%s1060_s1 + $0x340] sm:$0xff]  ;;  %541 = vmatprep.subr.mxu0 %v112_v32  ;;  %576 = vmatprep.subr.mxu1 %v144_v33  ;;  %v127_v39 = vld [vmem:[%s1060_s1 + $0x338] sm:$0xff]  ;;  %v94_v42 = vld [vmem:[%s1060_s1 + $0x230] sm:$0xff] }
  0x35   :  { %542 = vmatpush3.msra.mxu0 %v96_v34  ;;  %577 = vmatpush3.msra.mxu1 %v128_v35  ;;  %v126_v43 = vld [vmem:[%s1060_s1 + $0x330] sm:$0xff]  ;;  %v109_v44 = vld [vmem:[%s1060_s1 + $0x2a8] sm:$0xff]  ;;  %v108_v48 = vld [vmem:[%s1060_s1 + $0x2a0] sm:$0xff] }
  0x36   :  { %543 = vmatprep.subr.mxu0 %v111_v36  ;;  %578 = vmatprep.subr.mxu1 %v143_v37  ;;  %v141_v45 = vld [vmem:[%s1060_s1 + $0x3a8] sm:$0xff]  ;;  %v140_v49 = vld [vmem:[%s1060_s1 + $0x3a0] sm:$0xff]  ;;  %v107_v52 = vld [vmem:[%s1060_s1 + $0x298] sm:$0xff] }
  0x37   :  { %544 = vmatpush3.msra.mxu0 %v95_v38  ;;  %579 = vmatpush3.msra.mxu1 %v127_v39  ;;  %v93_v46 = vld [vmem:[%s1060_s1 + $0x228] sm:$0xff]  ;;  %v92_v50 = vld [vmem:[%s1060_s1 + $0x220] sm:$0xff]  ;;  %v139_v53 = vld [vmem:[%s1060_s1 + $0x398] sm:$0xff] }
  0x38   :  { %545 = vmatprep.subr.mxu0 %v110_v40  ;;  %580 = vmatprep.subr.mxu1 %v142_v41  ;;  %v125_v47 = vld [vmem:[%s1060_s1 + $0x328] sm:$0xff]  ;;  %v124_v51 = vld [vmem:[%s1060_s1 + $0x320] sm:$0xff]  ;;  %v91_v54 = vld [vmem:[%s1060_s1 + $0x218] sm:$0xff] }
  0x39   :  { %546 = vmatpush3.msra.mxu0 %v94_v42  ;;  %581 = vmatpush3.msra.mxu1 %v126_v43  ;;  %v123_v55 = vld [vmem:[%s1060_s1 + $0x318] sm:$0xff]  ;;  %v106_v56 = vld [vmem:[%s1060_s1 + $0x290] sm:$0xff]  ;;  %v105_v60 = vld [vmem:[%s1060_s1 + $0x288] sm:$0xff] }
  0x3a   :  { %547 = vmatprep.subr.mxu0 %v109_v44  ;;  %582 = vmatprep.subr.mxu1 %v141_v45  ;;  %v138_v57 = vld [vmem:[%s1060_s1 + $0x390] sm:$0xff]  ;;  %v137_v61 = vld [vmem:[%s1060_s1 + $0x388] sm:$0xff]  ;;  %v104_v0 = vld [vmem:[%s1060_s1 + $0x280] sm:$0xff] }
  0x3b   :  { %548 = vmatpush3.msra.mxu0 %v93_v46  ;;  %583 = vmatpush3.msra.mxu1 %v125_v47  ;;  %v90_v58 = vld [vmem:[%s1060_s1 + $0x210] sm:$0xff]  ;;  %v89_v62 = vld [vmem:[%s1060_s1 + $0x208] sm:$0xff]  ;;  %v136_v1 = vld [vmem:[%s1060_s1 + $0x380] sm:$0xff] }
  0x3c   :  { %549 = vmatprep.subr.mxu0 %v108_v48  ;;  %584 = vmatprep.subr.mxu1 %v140_v49  ;;  %v122_v59 = vld [vmem:[%s1060_s1 + $0x310] sm:$0xff]  ;;  %v121_v63 = vld [vmem:[%s1060_s1 + $0x308] sm:$0xff]  ;;  %v88_v2 = vld [vmem:[%s1060_s1 + $0x200] sm:$0xff] }
  0x3d   :  { %550 = vmatpush3.msra.mxu0 %v92_v50  ;;  %585 = vmatpush3.msra.mxu1 %v124_v51  ;;  %v21_v3 = vld [vmem:[%s1059_s0 + $0x28] sm:$0xff]  ;;  %v120_v4 = vld [vmem:[%s1060_s1 + $0x300] sm:$0xff]  ;;  %v23_v5 = vld [vmem:[%s1059_s0 + $0x38] sm:$0xff] }
  0x3e   :  { %551 = vmatprep.subr.mxu0 %v107_v52  ;;  %586 = vmatprep.subr.mxu1 %v139_v53  ;;  %v20_v6 = vld [vmem:[%s1059_s0 + $0x20] sm:$0xff]  ;;  %v22_v7 = vld [vmem:[%s1059_s0 + $0x30] sm:$0xff]  ;;  %s624_s0 = smov [#allocation3]  }
  0x3f   :  { %552 = vmatpush3.msra.mxu0 %v91_v54  ;;  %587 = vmatpush3.msra.mxu1 %v123_v55  ;;  %s448_s15 = sshll.u32 %s624_s0, 4  ;;  %s449_s15 = int_to_ptr.vmem [resolvable:$true] %s448_s15 }
  0x40   :  { %553 = vmatprep.subr.mxu0 %v106_v56  ;;  %588 = vmatprep.subr.mxu1 %v138_v57  ;;  %s602_s2 = scalar_lea.vmem %s449_s15, 128  ;;  %p607_p1 = scmp.lt.s32.totalorder %s449_s15, %s449_s15 }
  0x41   :  { %554 = vmatpush3.msra.mxu0 %v90_v58  ;;  %589 = vmatpush3.msra.mxu1 %v122_v59  ;;  %p603_p0 = scmp.ne.s32.totalorder %s449_s15, %s602_s2  ;;  %p608_p2 = scmp.lt.s32.totalorder %s602_s2, %s602_s2 }
  0x42   :  { %555 = vmatprep.subr.mxu0 %v105_v60  ;;  %590 = vmatprep.subr.mxu1 %v137_v61 }
  0x43   :  { %556 = vmatpush3.msra.mxu0 %v89_v62  ;;  %591 = vmatpush3.msra.mxu1 %v121_v63  ;;  %p609_p3 = por %p608_p2, %p607_p1 }
  0x44   :  { %557 = vmatprep.subr.mxu0 %v104_v0  ;;  %592 = vmatprep.subr.mxu1 %v136_v1 }
  0x45   :  { %558 = vmatpush3.msra.mxu0 %v88_v2  ;;  %358 = vmatprep.mubr.f32.mxu0 %v21_v3  ;;  %p610_p4 = pnand %p609_p3, %p603_p0 }
  0x46   :  { %593 = vmatpush3.msra.mxu1 %v120_v4  ;;  %428 = vmatprep.mubr.f32.mxu1 %v23_v5 }
  0x47   :  { %359 = vmatmul.mubr.f32.vlgmr.msra.gmra.mxu0 %v20_v6  ;;  %429 = vmatmul.mubr.f32.vlgmr.msra.gmra.mxu1 %v22_v7 }
  0xe4   :  { %v489_v8 = vpop.f32.mrf.mxu0 }
  0xe6   :  { %v524_v9 = vpop.f32.mrf.mxu1  ;;  %v490_v10 = vpop.f32.mrf.mxu0 }
  0xe7   :  { %v491_v11 = vadd.f32 %v490_v10, %v489_v8 }
  0xe8   :  { %v525_v13 = vpop.f32.mrf.mxu1 }
  0xe9   :  { %v221_v14 = vadd.f32 %v491_v11, %v153_v12  ;;  %v526_v15 = vadd.f32 %v525_v13, %v524_v9 }
  0xeb   :  { %v291_v20 = vadd.f32 %v526_v15, %v221_v14 }
 0x107   :  { %v559_v16 = vpop.f32.mrf.mxu0  ;;  %v594_v17 = vpop.f32.mrf.mxu1 }
 0x109   :  { %v560_v18 = vpop.f32.mrf.mxu0  ;;  %v595_v19 = vpop.f32.mrf.mxu1 }
 0x10a   :  { %v561_v21 = vadd.f32 %v560_v18, %v559_v16  ;;  %v596_v23 = vadd.f32 %v595_v19, %v594_v17 }
 0x10c   :  { %v361_v22 = vadd.f32 %v561_v21, %v291_v20 }
 0x10e   :  { %v431_v24 = vadd.f32 %v596_v23, %v361_v22 }
 0x110   :  { %v456_v25 = vmul.f32 -1.442695, %v431_v24 }
 0x112   :  { %598 = vpow2.f32 %v456_v25 }
 0x11f   :  { %v599_v26 = vpop.eup %598 }
 0x120   :  { %v437_v27 = vadd.f32 1.0, %v599_v26 }
 0x122   :  { %600 = vrcp.f32 %v437_v27 }
 0x12f   :  { %v601_v28 = vpop.eup %600 }
 0x130   :  { %441 = vst.msk [vmem:[#allocation3] sm:$0xff] %vm440_vm0, %v601_v28 }
 0x131   :  { %613 = shalt.err (!%p610_p4)
}
 0x132   :  { %451 = dma.vmem_to_hbm [thread:$0]  %s449_s15, 128, %s1062_s3, [#allocation4]  }
 0x133   :  { %622 = dma.done.wait [#allocation4], 128  }
 0x134   :  { %623 = vsyncadd [#allocation4], 4294967168 }
 0x135   :  { %455 = vsyncpa [#allocation4], 1 }

</bundles_post_ra>
